<compile_context>
chip_gen: v7x
topology: tpu7x:2x2x1
jax: 0.10.0
libtpu: 0.0.40
codegen_flags: <defaults>
</compile_context>

<pallas_src>
import functools

import jax
import jax.numpy as jnp
from jax.experimental import pallas as pl
from jax.experimental.pallas import tpu as pltpu


def rbf_kernel(C, num_out, x_ref, ctn_ref, params_ref, wta_ref, o_ref):
    # x_ref:      (TB, D)           batch tile of inputs
    # ctn_ref:    (D, C)            -2 * s * centers^T   (s = -0.5/sigma^2, per-center)
    # params_ref: (3, P)            row 0: s               (C lanes)
    #                               row 1: s * ||c||^2     (C lanes)
    #                               row 2: linear bias     (num_out lanes)
    # wta_ref:    (C, num_out+1)    [W^T | 1]; ones column yields the softmax denom
    x = x_ref[...]                                   # (TB, D)
    s = params_ref[0:1, 0:C]                         # (1, C)
    sc2 = params_ref[1:2, 0:C]                       # (1, C)
    bias = params_ref[2:3, 0:num_out]                # (1, num_out)

    # logits = s * (||x||^2 + ||c||^2 - 2 x.c); the -2*s scaling lives inside the MXU
    # operand and s*||c||^2 is a precomputed (1, C) row.  True logits are <= 0, so a
    # single min-vs-0 kills the expansion's +eps noise before exp().
    x2 = jnp.sum(x * x, axis=1, keepdims=True)       # (TB, 1)
    xcs = jnp.dot(x, ctn_ref[...], preferred_element_type=jnp.float32)   # (TB, C), MXU
    logits = jnp.minimum(xcs + x2 * s + sc2, 0.0)

    # Softmax over centers (PyTorch dim=1) with the denominator folded into the second
    # matmul: acc[:, -1] = sum_c e_c.  Reciprocal goes to the (free) EUP slot.
    m = jnp.max(logits, axis=1, keepdims=True)
    e = jnp.exp(logits - m)
    acc = jnp.dot(e, wta_ref[...], preferred_element_type=jnp.float32)   # (TB, num_out+1)
    inv_denom = pl.reciprocal(acc[:, num_out:num_out + 1], approx=True)  # (TB, 1)
    o_ref[...] = acc[:, 0:num_out] * inv_denom + bias


def _round_up(n, m):
    return ((n + m - 1) // m) * m


def _pick_batch_tile(B, max_tile):
    """Batch tile: always a multiple of 8, as large as max_tile allows, balanced over
    the number of tiles, and capped so the grid keeps >= 2 steps when B permits (lets
    v7x's second TensorCore pick up work via 'parallel'; harmless on v5e/v6e)."""
    max_tile = max(8, (max_tile // 8) * 8)
    full = _round_up(B, 8)
    n = max(1, pl.cdiv(full, max_tile))
    if full >= 16:
        n = max(n, 2)
    tb = _round_up(pl.cdiv(full, n), 8)
    return min(tb, full)


def rbf_normalized_net(x, centers, sigma, w, b, *, max_batch_tile=4096):
    """x: (B, D), centers: (C, D), sigma: (1, C), w: (num_out, C), b: (num_out,)"""
    B, D = x.shape
    C = centers.shape[0]
    num_out = w.shape[0]

    # ---- one-time parameter prep (glue; in a real model these are precomputed) ----
    s = -0.5 / (sigma * sigma)                           # (1, C)   -0.5/sigma^2
    ct = centers.T                                       # (D, C)
    c2 = jnp.sum(ct * ct, axis=0, keepdims=True)         # (1, C)   born lane-major
    ctn = (-2.0 * s) * ct                                # (D, C)   fold scaling into MXU operand
    sc2 = s * c2                                         # (1, C)
    bias = b.reshape(1, num_out)
    P = max(C, num_out)
    pad_row = lambda r: jnp.pad(r, ((0, 0), (0, P - r.shape[1])))
    params = jnp.concatenate([pad_row(s), pad_row(sc2), pad_row(bias)], axis=0)  # (3, P)
    wta = jnp.concatenate([w.T, jnp.ones((C, 1), w.dtype)], axis=1)  # (C, num_out+1)

    # ---- batch tiling: cdiv grid + zero-padded tail, tb always a multiple of 8 ----
    tb = _pick_batch_tile(B, max_batch_tile)
    n_tiles = pl.cdiv(B, tb)
    B_pad = n_tiles * tb
    x_p = x if B_pad == B else jnp.pad(x, ((0, B_pad - B), (0, 0)))

    const = lambda shape: pl.BlockSpec(shape, lambda i: (0,) * len(shape))

    out = pl.pallas_call(
        functools.partial(rbf_kernel, C, num_out),
        out_shape=jax.ShapeDtypeStruct((B_pad, num_out), jnp.float32),
        grid=(n_tiles,),
        in_specs=[
            pl.BlockSpec((tb, D), lambda i: (i, 0)),      # x: streamed over batch
            const((D, C)),                                # -2*s*centers^T: VMEM-resident
            const((3, P)),                                # packed small params: one DMA
            const((C, num_out + 1)),                      # [W^T | 1]: VMEM-resident
        ],
        out_specs=pl.BlockSpec((tb, num_out), lambda i: (i, 0)),
        compiler_params=pltpu.CompilerParams(
            dimension_semantics=("parallel",),            # v7x: shard grid over 2 TCs
        ),
    )(x_p, ctn, params, wta)

    return out if B_pad == B else out[:B]


def reference(x, centers, sigma, w, b):
    # Pure-JAX mirror of the PyTorch forward (for a sanity check).
    d = x[:, None, :] - centers[None, :, :]
    dist2 = jnp.sum(d * d, axis=2)
    logits = -dist2 / (2.0 * sigma * sigma)
    p = jax.nn.softmax(logits, axis=1)
    return p @ w.T + b


if __name__ == "__main__":
    key = jax.random.PRNGKey(0)
    k_x, k_c, k_w, k_b = jax.random.split(key, 4)

    B, D, C, num_out = 8, 16, 32, 8

    x = jax.random.normal(k_x, (B, D), dtype=jnp.float32)
    centers = jax.random.normal(k_c, (C, D), dtype=jnp.float32)
    sigma = jnp.ones((1, C), dtype=jnp.float32) / 10.0
    # nn.Linear default init: uniform(-1/sqrt(C), 1/sqrt(C)), done deterministically here.
    bound = 1.0 / (C ** 0.5)
    w = jax.random.uniform(k_w, (num_out, C), minval=-bound, maxval=bound,
                           dtype=jnp.float32)
    b = jax.random.uniform(k_b, (num_out,), minval=-bound, maxval=bound,
                           dtype=jnp.float32)

    out = rbf_normalized_net(x, centers, sigma, w, b)
    jax.block_until_ready(out)

    ref = reference(x, centers, sigma, w, b)
    assert out.shape == (B, num_out)
    # Tolerance accommodates the EUP approx reciprocal in the softmax denominator and
    # the ||x||^2 + ||c||^2 - 2 x.c expansion (same numerics class as the prior version).
    assert jnp.allclose(out, ref, atol=2e-4, rtol=2e-4)

    print("KERNEL_OK")
</pallas_src>

<mosaic_0001>
module attributes {stable_mosaic.version = 11 : i64} {
  func.func @rbf_kernel(%arg0: i32, %arg1: memref<8x16xf32, #tpu.memory_space<vmem>>, %arg2: memref<16x32xf32, #tpu.memory_space<vmem>>, %arg3: memref<3x32xf32, #tpu.memory_space<vmem>>, %arg4: memref<32x9xf32, #tpu.memory_space<vmem>>, %arg5: memref<8x8xf32, #tpu.memory_space<vmem>>) attributes {dimension_semantics = [#tpu.dimension_semantics<parallel>], iteration_bounds = array<i64: 1>, scalar_prefetch = 0 : i64, scratch_operands = 0 : i64, tpu.core_type = #tpu.core_type<tc>, window_params = [{transform_indices = @transform_0, window_bounds = array<i64: 8, 16>}, {pipeline_mode = #tpu.pipeline_mode<synchronous>, transform_indices = @transform_1, window_bounds = array<i64: 16, 32>}, {pipeline_mode = #tpu.pipeline_mode<synchronous>, transform_indices = @transform_2, window_bounds = array<i64: 3, 32>}, {pipeline_mode = #tpu.pipeline_mode<synchronous>, transform_indices = @transform_3, window_bounds = array<i64: 32, 9>}, {transform_indices = @transform_4, window_bounds = array<i64: 8, 8>}]} {
    %c0 = arith.constant 0 : index
    %c0_0 = arith.constant 0 : index
    %0 = vector.load %arg1[%c0, %c0_0] : memref<8x16xf32, #tpu.memory_space<vmem>>, vector<8x16xf32>
    %c0_1 = arith.constant 0 : index
    %c0_2 = arith.constant 0 : index
    %1 = vector.load %arg3[%c0_1, %c0_2] : memref<3x32xf32, #tpu.memory_space<vmem>>, vector<1x32xf32>
    %c1 = arith.constant 1 : index
    %c0_3 = arith.constant 0 : index
    %2 = vector.load %arg3[%c1, %c0_3] : memref<3x32xf32, #tpu.memory_space<vmem>>, vector<1x32xf32>
    %c2 = arith.constant 2 : index
    %c0_4 = arith.constant 0 : index
    %3 = vector.load %arg3[%c2, %c0_4] : memref<3x32xf32, #tpu.memory_space<vmem>>, vector<1x8xf32>
    %4 = arith.mulf %0, %0 : vector<8x16xf32>
    %cst = arith.constant dense<0.000000e+00> : vector<8xf32>
    %5 = vector.multi_reduction <add>, %4, %cst [1] : vector<8x16xf32> to vector<8xf32>
    %6 = vector.shape_cast %5 : vector<8xf32> to vector<8x1xf32>
    %c0_5 = arith.constant 0 : index
    %c0_6 = arith.constant 0 : index
    %7 = vector.load %arg2[%c0_5, %c0_6] : memref<16x32xf32, #tpu.memory_space<vmem>>, vector<16x32xf32>
    %cst_7 = arith.constant dense<0.000000e+00> : vector<8x32xf32>
    %8 = tpu.matmul %0, %7, %cst_7 {dimension_numbers = #tpu.dot_dimension_numbers<[1], [0], [0], [1], [0, 0, 1, 1], [], []>} : vector<8x16xf32>, vector<16x32xf32>, vector<8x32xf32> -> vector<8x32xf32>
    %9 = vector.broadcast %6 : vector<8x1xf32> to vector<8x32xf32>
    %10 = vector.broadcast %1 : vector<1x32xf32> to vector<8x32xf32>
    %11 = arith.mulf %9, %10 : vector<8x32xf32>
    %12 = arith.addf %8, %11 : vector<8x32xf32>
    %13 = vector.broadcast %2 : vector<1x32xf32> to vector<8x32xf32>
    %14 = arith.addf %12, %13 : vector<8x32xf32>
    %cst_8 = arith.constant 0.000000e+00 : f32
    %15 = vector.broadcast %cst_8 : f32 to vector<8x32xf32>
    %16 = arith.minimumf %14, %15 : vector<8x32xf32>
    %cst_9 = arith.constant dense<0xFF800000> : vector<8xf32>
    %17 = vector.multi_reduction <maximumf>, %16, %cst_9 [1] : vector<8x32xf32> to vector<8xf32>
    %18 = vector.shape_cast %17 : vector<8xf32> to vector<8x1xf32>
    %19 = vector.broadcast %18 : vector<8x1xf32> to vector<8x32xf32>
    %20 = arith.subf %16, %19 : vector<8x32xf32>
    %21 = math.exp %20 : vector<8x32xf32>
    %c0_10 = arith.constant 0 : index
    %c0_11 = arith.constant 0 : index
    %22 = vector.load %arg4[%c0_10, %c0_11] : memref<32x9xf32, #tpu.memory_space<vmem>>, vector<32x9xf32>
    %cst_12 = arith.constant dense<0.000000e+00> : vector<8x9xf32>
    %23 = tpu.matmul %21, %22, %cst_12 {dimension_numbers = #tpu.dot_dimension_numbers<[1], [0], [0], [1], [0, 0, 1, 1], [], []>} : vector<8x32xf32>, vector<32x9xf32>, vector<8x9xf32> -> vector<8x9xf32>
    %24 = vector.extract_strided_slice %23 {offsets = [0, 8], sizes = [8, 1], strides = [1, 1]} : vector<8x9xf32> to vector<8x1xf32>
    %25 = tpu.reciprocal %24 {approx = true} : vector<8x1xf32> -> vector<8x1xf32>
    %26 = vector.extract_strided_slice %23 {offsets = [0, 0], sizes = [8, 8], strides = [1, 1]} : vector<8x9xf32> to vector<8x8xf32>
    %27 = vector.broadcast %25 : vector<8x1xf32> to vector<8x8xf32>
    %28 = arith.mulf %26, %27 : vector<8x8xf32>
    %29 = vector.broadcast %3 : vector<1x8xf32> to vector<8x8xf32>
    %30 = arith.addf %28, %29 : vector<8x8xf32>
    %c0_13 = arith.constant 0 : index
    %c0_14 = arith.constant 0 : index
    %31 = vector.load %arg5[%c0_13, %c0_14] : memref<8x8xf32, #tpu.memory_space<vmem>>, vector<8x8xf32>
    tpu.vector_store %arg5[%c0_13, %c0_14], %30 {strides = array<i32>} : memref<8x8xf32, #tpu.memory_space<vmem>>, vector<8x8xf32>,
    return
  }
  func.func @transform_0(%arg0: i32) -> (i32, i32) {
    %c0_i32 = arith.constant 0 : i32
    %c0_i32_0 = arith.constant 0 : i32
    return %arg0, %c0_i32 : i32, i32
  }
  func.func @transform_1(%arg0: i32) -> (i32, i32) {
    %c0_i32 = arith.constant 0 : i32
    %c0_i32_0 = arith.constant 0 : i32
    %c0_i32_1 = arith.constant 0 : i32
    return %c0_i32, %c0_i32_0 : i32, i32
  }
  func.func @transform_2(%arg0: i32) -> (i32, i32) {
    %c0_i32 = arith.constant 0 : i32
    %c0_i32_0 = arith.constant 0 : i32
    %c0_i32_1 = arith.constant 0 : i32
    return %c0_i32, %c0_i32_0 : i32, i32
  }
  func.func @transform_3(%arg0: i32) -> (i32, i32) {
    %c0_i32 = arith.constant 0 : i32
    %c0_i32_0 = arith.constant 0 : i32
    %c0_i32_1 = arith.constant 0 : i32
    return %c0_i32, %c0_i32_0 : i32, i32
  }
  func.func @transform_4(%arg0: i32) -> (i32, i32) {
    %c0_i32 = arith.constant 0 : i32
    %c0_i32_0 = arith.constant 0 : i32
    return %arg0, %c0_i32 : i32, i32
  }
}

</mosaic_0001>

<bundles_post_ra>
// kernel: tpu_custom_call.1
= control target key start
LH: loop header
LB: loop body
LE: loop exit
PB: predicated region body
PF: predicated region fallthrough
CT: control target
= control target key end

     0   :  { %v300_v3 = vmov 0.0|0.0   ;;  %vm301_vm0 = vmmov 0   ;;  %v302_v5 = vmov 0.0   ;;  %s374_s0 = inlined_call_operand.vmem [shape: f32[8,16], index: 0, kind: input, shape index: {}]   ;;  %s375_s1 = inlined_call_operand.vmem [shape: f32[16,32], index: 1, kind: input, shape index: {}]   ;;  %s376_s2 = inlined_call_operand.vmem [shape: f32[3,32], index: 2, kind: input, shape index: {}]   ;;  %s377_s3 = inlined_call_operand.vmem [shape: f32[32,9], index: 3, kind: input, shape index: {}]   ;;  %s378_s4 = inlined_call_operand.hbm [shape: f32[8,8], index: 4, kind: output, shape index: {}]  }
   0x1   :  { %v27_v0 = vld [vmem:[%s375_s1] sm:$0xff]  ;;  %v28_v1 = vld [vmem:[%s375_s1 + $0x8] sm:$0xff]  ;;  %256 = vmatprep.subr.bf16.mxu0 %v300_v3  ;;  %242 = vmatprep.mubr.msk.f32.mxu0 %vm301_vm0, %v302_v5 }
   0x2   :  { %v18_v2 = vld [vmem:[%s374_s0] sm:$0xff]  ;;  %v257_v4 = vpack.c.bf16 %v28_v1, %v27_v0 }
   0x3   :  { %v22_v6 = vmul.f32 %v18_v2, %v18_v2 }
   0x4   :  { %9 = vsyncpa [#allocation3], 0  ;;  %vm23_vm1 = vcmask 130048   ;;  %259 = vmatprep.subr.bf16.mxu1 %v300_v3  ;;  %253 = vmatprep.mubr.msk.f32.mxu1 %vm301_vm0, %v302_v5  ;;  %v225_v8 = vld [vmem:[%s376_s2] ss:$0 sm:$0xff]  ;;  %vm113_vm2 = vcmask 261120  }
   0x5   :  { %258 = vmatpush3.bf16.msra.mxu0 %v257_v4  ;;  %v24_v7 = vsel %vm23_vm1, %v22_v6, 0.0  ;;  %v227_v11 = vld [vmem:[%s376_s2 + $0x1] ss:$0 sm:$0xff]  ;;  %v121_v19 = vld [vmem:[%s377_s3 + $0x8] sm:$0xff]  ;;  %v122_v20 = vld [vmem:[%s377_s3 + $0x10] sm:$0xff]  ;;  %v303_v28 = vmov 8  }
   0x6   :  { %25 = vadd.xlane.f32.xlu0 %v24_v7  ;;  %v120_v18 = vld [vmem:[%s377_s3] sm:$0xff]  ;;  %v123_v22 = vld [vmem:[%s377_s3 + $0x18] sm:$0xff]  ;;  %270 = vset.pattern.permute.xlu1 %v303_v28  ;;  %s304_s6 = smov [#allocation2]   ;;  %vm209_vm3 = vcmask 64512  }
   0x7   :  { %v260_v21 = vpack.c.bf16 %v121_v19, %v120_v18  ;;  %v263_v23 = vpack.c.bf16 %v123_v22, %v122_v20  ;;  %271 = vset.pattern.permute.xlu0 %v303_v28  ;;  %v229_v32 = vld [vmem:[%s376_s2 + $0x2] ss:$0 sm:$0xff]  ;;  %s217_s7 = sshll.u32 %s304_s6, 4  ;;  %s218_s7 = int_to_ptr.vmem [resolvable:$true] %s217_s7 }
   0x8   :  { %243 = vmatmul.mubr.msk.f32.vlgmr.msra.gmra.mrb[0].mxu0 %vm23_vm1, %v18_v2  ;;  %s276_s8 = scalar_lea.vmem %s218_s7, 128  ;;  %p281_p1 = scmp.lt.s32.totalorder %s218_s7, %s218_s7 }
   0x9   :  { %261 = vmatpush3.bf16.msra.mxu1 %v260_v21  ;;  %p277_p0 = scmp.ne.s32.totalorder %s218_s7, %s276_s8  ;;  %p282_p2 = scmp.lt.s32.totalorder %s276_s8, %s276_s8 }
   0xa   :  { %262 = vmatprep.subr.bf16.mxu1 %v300_v3 }
   0xb   :  { %p283_p3 = por %p282_p2, %p281_p1 }
   0xd   :  { %264 = vmatpush3.bf16.msra.mxu1 %v263_v23  ;;  %p284_p4 = pnand %p283_p3, %p277_p0 }
  0x93   :  { %v26_v9 = vpop.xlane.xlu0 %25 }
  0x94   :  { %v33_v10 = vmul.f32 %v225_v8, %v26_v9 }
  0xdb   :  { %v103_v12 = vpop.f32.mrb[0].mxu0 }
  0xdc   :  { %v104_v13 = vadd.f32 %v103_v12, %v33_v10  ;;  %v244_v14 = vpop.f32.mrb[1].mxu0 }
  0xde   :  { %v111_v15 = vadd.f32 %v227_v11, %v104_v13 }
  0xe0   :  { %v112_v16 = vmin.f32 %v111_v15, 0.0 }
  0xe2   :  { %v114_v17 = vsel %vm113_vm2, %v112_v16, -inf }
  0xe3   :  { %115 = vmax.xlane.f32.xlu0 %v114_v17 }
 0x170   :  { %v116_v24 = vpop.xlane.xlu0 %115 }
 0x171   :  { %v117_v25 = vsub.f32 %v112_v16, %v116_v24 }
 0x173   :  { %v118_v26 = vmul.f32 1.442695, %v117_v25 }
 0x175   :  { %272 = vpow2.f32 %v118_v26 }
 0x17f   :  { %v273_v27 = vpop.eup %272 }
 0x180   :  { %254 = vmatmul.mubr.msk.f32.vlgmr.msra.gmra.mrb[0].mxu1 %vm113_vm2, %v273_v27 }
 0x253   :  { %v193_v29 = vpop.f32.mrb[0].mxu1 }
 0x254   :  { %274 = vrcp.f32 %v193_v29  ;;  %v255_v30 = vpop.f32.mrb[1].mxu1 }
 0x25e   :  { %v275_v31 = vpop.eup %274 }
 0x25f   :  { %200 = vperm.xlu1 %270, %v275_v31  }
 0x2de   :  { %v201_v33 = vpop.permute.xlu1 %200 }
 0x2df   :  { %v203_v34 = vmul.f32 %v201_v33, %v193_v29 }
 0x2e1   :  { %v208_v35 = vadd.f32 %v229_v32, %v203_v34 }
 0x2e3   :  { %210 = vst.msk [vmem:[#allocation2] sm:$0xff] %vm209_vm3, %v208_v35 }
 0x2e4   :  { %287 = shalt.err (!%p284_p4)
}
 0x2e5   :  { %s288_s11 = scalar_lea.hbm %s378_s4, 128 }
 0x2e6   :  { %p289_p5 = scmp.ne.s32.totalorder %s378_s4, %s288_s11  ;;  %p292_p6 = scmp.lt.u32.totalorder %s288_s11, %s378_s4 }
 0x2e8   :  { %p294_p7 = pnand %p292_p6, %p289_p5 }
 0x2ea   :  { %297 = shalt.err (!%p294_p7)
}
 0x2eb   :  { %220 = dma.vmem_to_hbm [thread:$0]  %s218_s7, 128, %s378_s4, [#allocation3]  }
 0x2ec   :  { %298 = dma.done.wait [#allocation3], 128  }
 0x2ed   :  { %299 = vsyncadd [#allocation3], 4294967168 }
 0x2ee   :  { %224 = vsyncpa [#allocation3], 1 }

</bundles_post_ra>
